<compile_context>
chip_gen: v7x
topology: tpu7x:2x2x1
jax: 0.10.0
libtpu: 0.0.40
codegen_flags: <defaults>
</compile_context>

<pallas_src>
import math
from functools import partial

import jax
import jax.numpy as jnp
from jax.experimental import pallas as pl
from jax.experimental.pallas import tpu as pltpu


def _round_up(x, m):
    return ((x + m - 1) // m) * m


def _cdiv(a, b):
    return (a + b - 1) // b


# ----------------------------- kernels ------------------------------------- #

def _sinusoidal_kernel(obs_ref, freq_ref, shift_ref, out_ref, *, phase_pos):
    """Fused sinusoidal phase embedding + concat (Sinusoidal / SinusoidalV2).

    freq_ref  : (1, E) = [2*pi*freqs | 2*pi*freqs]   (host-precomputed, exact)
    shift_ref : (1, E) = [0 .. 0    | pi/2 .. pi/2]
    cos(x) == sin(x + pi/2), so a single jnp.sin over the (TB, P*E) angle slab
    covers all phases and both sin/cos halves.
    """
    obs = obs_ref[...]                                   # (TB, obs_dim)
    fp = freq_ref[...]                                   # (1, E)
    sh = shift_ref[...]                                  # (1, E)

    angle_pieces = []
    for pos in phase_pos:                                # tiny static unroll over P
        ph = obs[:, pos:pos + 1]                         # (TB, 1)
        angle_pieces.append(ph * fp + sh)                # (TB, E)   VPU fma
    angles = jnp.concatenate(angle_pieces, axis=-1)      # (TB, P*E)
    emb = jnp.sin(angles)                                # ONE transcendental slab
    out_ref[...] = jnp.concatenate([obs, emb], axis=-1)  # single dense store


def _learnable_kernel(obs_ref, w1_ref, b1_ref, w2bd_ref, b2_ref, out_ref, *, phase_pos):
    """Fused Learnable MLP(1 -> 2E -> E) per phase + concat.

    Hidden activations for all phases are laid out along the LANE axis
    (h : (TB, P*2E)); w2bd is the block-diagonal second-layer weight
    (P*2E, P*E), so one MXU matmul yields all phase embeddings already in
    the lane order the final concat needs.
    """
    obs = obs_ref[...]                                   # (TB, obs_dim)
    w1 = w1_ref[...]                                     # (1, 2E)   (Linear(1,2E).weight.T)
    b1 = b1_ref[...]                                     # (1, 2E)
    w2 = w2bd_ref[...]                                   # (P*2E, P*E)  block-diagonal
    b2 = b2_ref[...]                                     # (1, P*E)

    h_pieces = []
    for pos in phase_pos:
        ph = obs[:, pos:pos + 1]                         # (TB, 1)
        h_pieces.append(ph * w1 + b1)                    # (TB, 2E)  scale + bias (VPU)
    h = jnp.maximum(jnp.concatenate(h_pieces, axis=-1), 0.0)               # (TB, P*2E)
    emb = jnp.dot(h, w2, preferred_element_type=jnp.float32) + b2          # (TB, P*E), 1 MXU matmul
    out_ref[...] = jnp.concatenate([obs, emb], axis=-1)                    # single dense store


# ----------------------------- module wrapper -------------------------------- #

class PhaseEmbeddingModuleV2:
    """JAX/Pallas port of the PyTorch PhaseEmbeddingModuleV2."""

    def __init__(self, phase_pos, embed_type, embed_dim):
        assert embed_dim % 2 == 0
        self.phase_pos = tuple(int(p) for p in phase_pos)
        self.embed_type = embed_type
        self.embed_dim = embed_dim
        P = len(self.phase_pos)
        E = embed_dim
        L = E // 2

        if embed_type == "Original":
            raise ValueError("Original embedding is not valid for PhaseEmbeddingModuleV2")
        elif embed_type in ("Sinusoidal", "SinusoidalV2"):
            if embed_type == "Sinusoidal":
                freqs = 2.0 ** jnp.arange(L, dtype=jnp.float32)
            else:
                freqs = 1.0 / (10000.0 ** (jnp.arange(L, dtype=jnp.float32) / L))
            self.freqs = freqs.reshape(1, L)                       # reference only
            f2pi = (2.0 * math.pi) * freqs
            self.freq_pair = jnp.concatenate([f2pi, f2pi]).reshape(1, E)
            self.shift_pair = jnp.concatenate(
                [jnp.zeros((L,), jnp.float32),
                 jnp.full((L,), 0.5 * math.pi, dtype=jnp.float32)]).reshape(1, E)
        elif embed_type == "Learnable":
            # Deterministic synthetic params (shapes of nn.Linear(1,2E) / nn.Linear(2E,E)).
            k1, k2, k3, k4 = jax.random.split(jax.random.PRNGKey(42), 4)
            self.w1 = 0.5 * jax.random.normal(k1, (1, 2 * E), dtype=jnp.float32)   # W1.T
            self.b1 = 0.1 * jax.random.normal(k2, (1, 2 * E), dtype=jnp.float32)
            self.w2 = 0.5 * jax.random.normal(k3, (2 * E, E), dtype=jnp.float32)   # W2.T
            self.b2 = 0.1 * jax.random.normal(k4, (1, E), dtype=jnp.float32)
            # Block-diagonal second layer / tiled bias (host-precomputed once).
            self.w2_bd = jnp.kron(jnp.eye(P, dtype=jnp.float32), self.w2)          # (P*2E, P*E)
            self.b2_t = jnp.tile(self.b2, (1, P))                                  # (1, P*E)
        else:
            raise ValueError(f"Unknown embed_type {embed_type}")

    # ---------------- Pallas forward ---------------- #
    def __call__(self, obs, *, batch_tile=4096):
        B, obs_dim = obs.shape
        P = len(self.phase_pos)
        E = self.embed_dim
        out_dim = obs_dim + P * E

        # Batch tile: big enough to amortize per-step overhead, small enough to
        #  (a) keep >= 2 grid steps so both v7x TensorCores get work,
        #  (b) keep double-buffered in+out tiles well under v5e's 16 MiB scoped VMEM
        #      (and v7x's 64 MiB physical VMEM).
        bytes_per_row = 4 * (obs_dim + out_dim) * 2          # f32, 2x double-buffer
        tb_vmem = max(8, ((8 * 1024 * 1024) // bytes_per_row) // 8 * 8)
        tb_split = max(8, _round_up(_cdiv(B, 2), 8))          # >= 2 steps when B > 8
        tb = max(8, min(_round_up(batch_tile, 8), tb_vmem, tb_split))
        grid = (_cdiv(B, tb),)                                # ragged B: trailing partial
                                                              # block is masked on store

        obs_spec = pl.BlockSpec((tb, obs_dim), lambda i: (i, 0))
        out_spec = pl.BlockSpec((tb, out_dim), lambda i: (i, 0))
        out_shape = jax.ShapeDtypeStruct((B, out_dim), jnp.float32)
        bcast = lambda shp: pl.BlockSpec(shp, lambda i: (0, 0))
        cparams = pltpu.CompilerParams(dimension_semantics=("parallel",))

        if self.embed_type in ("Sinusoidal", "SinusoidalV2"):
            kernel = partial(_sinusoidal_kernel, phase_pos=self.phase_pos)
            return pl.pallas_call(
                kernel,
                out_shape=out_shape,
                grid=grid,
                in_specs=[obs_spec, bcast((1, E)), bcast((1, E))],
                out_specs=out_spec,
                compiler_params=cparams,
            )(obs, self.freq_pair, self.shift_pair)
        else:  # Learnable
            kernel = partial(_learnable_kernel, phase_pos=self.phase_pos)
            return pl.pallas_call(
                kernel,
                out_shape=out_shape,
                grid=grid,
                in_specs=[obs_spec,
                          bcast((1, 2 * E)),
                          bcast((1, 2 * E)),
                          bcast((P * 2 * E, P * E)),
                          bcast((1, P * E))],
                out_specs=out_spec,
                compiler_params=cparams,
            )(obs, self.w1, self.b1, self.w2_bd, self.b2_t)

    # ---------------- pure-JAX reference (torch forward semantics) ---------------- #
    def reference(self, obs):
        idx = jnp.array(self.phase_pos)
        phases = obs[..., idx][..., None]                                  # (B, P, 1)
        if self.embed_type in ("Sinusoidal", "SinusoidalV2"):
            angles = 2.0 * math.pi * phases * self.freqs[0]                # (B, P, L)
            emb = jnp.concatenate([jnp.sin(angles), jnp.cos(angles)], -1)  # (B, P, E)
        else:
            h = jnp.maximum(phases * self.w1[0] + self.b1[0], 0.0)         # (B, P, 2E)
            emb = jnp.einsum("bph,he->bpe", h, self.w2) + self.b2[0]       # (B, P, E)
        combined = emb.reshape(obs.shape[0], -1)                           # (B, P*E)
        return jnp.concatenate([obs, combined], axis=-1)


# ----------------------------- main ------------------------------------------ #

if __name__ == "__main__":
    obs_dim = 32
    phase_pos = [3, 7]
    embed_dim = 8

    k1, k2 = jax.random.split(jax.random.PRNGKey(0))
    # 16 = aligned batch (2 grid steps); 19 exercises the masked partial-block path.
    obs_cases = {
        16: jax.random.uniform(k1, (16, obs_dim), dtype=jnp.float32),   # phases in [0, 1)
        19: jax.random.uniform(k2, (19, obs_dim), dtype=jnp.float32),
    }

    ok = True
    for embed_type in ("SinusoidalV2", "Sinusoidal", "Learnable"):
        mod = PhaseEmbeddingModuleV2(phase_pos, embed_type, embed_dim)
        for B, obs in obs_cases.items():
            out = jax.block_until_ready(mod(obs))
            ref = mod.reference(obs)
            assert out.shape == (B, obs_dim + len(phase_pos) * embed_dim)
            if not jnp.allclose(out, ref, atol=5e-5, rtol=1e-5):
                ok = False
                print(f"MISMATCH for {embed_type} (B={B}): max err "
                      f"{float(jnp.max(jnp.abs(out - ref)))}")

    if ok:
        print("KERNEL_OK")
</pallas_src>

<mosaic_0001>
module attributes {stable_mosaic.version = 11 : i64} {
  func.func @_sinusoidal_kernel(%arg0: i32, %arg1: memref<8x32xf32, #tpu.memory_space<vmem>>, %arg2: memref<1x8xf32, #tpu.memory_space<vmem>>, %arg3: memref<1x8xf32, #tpu.memory_space<vmem>>, %arg4: memref<8x48xf32, #tpu.memory_space<vmem>>) attributes {dimension_semantics = [#tpu.dimension_semantics<parallel>], iteration_bounds = array<i64: 2>, scalar_prefetch = 0 : i64, scratch_operands = 0 : i64, tpu.core_type = #tpu.core_type<tc>, window_params = [{transform_indices = @transform_0, window_bounds = array<i64: 8, 32>}, {pipeline_mode = #tpu.pipeline_mode<synchronous>, transform_indices = @transform_1, window_bounds = array<i64: 1, 8>}, {pipeline_mode = #tpu.pipeline_mode<synchronous>, transform_indices = @transform_2, window_bounds = array<i64: 1, 8>}, {transform_indices = @transform_3, window_bounds = array<i64: 8, 48>}]} {
    %c0 = arith.constant 0 : index
    %c0_0 = arith.constant 0 : index
    %0 = vector.load %arg1[%c0, %c0_0] : memref<8x32xf32, #tpu.memory_space<vmem>>, vector<8x32xf32>
    %c0_1 = arith.constant 0 : index
    %c0_2 = arith.constant 0 : index
    %1 = vector.load %arg2[%c0_1, %c0_2] : memref<1x8xf32, #tpu.memory_space<vmem>>, vector<1x8xf32>
    %c0_3 = arith.constant 0 : index
    %c0_4 = arith.constant 0 : index
    %2 = vector.load %arg3[%c0_3, %c0_4] : memref<1x8xf32, #tpu.memory_space<vmem>>, vector<1x8xf32>
    %3 = vector.extract_strided_slice %0 {offsets = [0, 3], sizes = [8, 1], strides = [1, 1]} : vector<8x32xf32> to vector<8x1xf32>
    %4 = vector.broadcast %3 : vector<8x1xf32> to vector<8x8xf32>
    %5 = vector.broadcast %1 : vector<1x8xf32> to vector<8x8xf32>
    %6 = arith.mulf %4, %5 : vector<8x8xf32>
    %7 = vector.broadcast %2 : vector<1x8xf32> to vector<8x8xf32>
    %8 = arith.addf %6, %7 : vector<8x8xf32>
    %9 = vector.extract_strided_slice %0 {offsets = [0, 7], sizes = [8, 1], strides = [1, 1]} : vector<8x32xf32> to vector<8x1xf32>
    %10 = vector.broadcast %9 : vector<8x1xf32> to vector<8x8xf32>
    %11 = vector.broadcast %1 : vector<1x8xf32> to vector<8x8xf32>
    %12 = arith.mulf %10, %11 : vector<8x8xf32>
    %13 = vector.broadcast %2 : vector<1x8xf32> to vector<8x8xf32>
    %14 = arith.addf %12, %13 : vector<8x8xf32>
    %15 = tpu.concatenate %8, %14 in 1 : vector<8x8xf32>, vector<8x8xf32> -> vector<8x16xf32>
    %16 = math.sin %15 : vector<8x16xf32>
    %17 = tpu.concatenate %0, %16 in 1 : vector<8x32xf32>, vector<8x16xf32> -> vector<8x48xf32>
    %c0_5 = arith.constant 0 : index
    %c0_6 = arith.constant 0 : index
    %18 = vector.load %arg4[%c0_5, %c0_6] : memref<8x48xf32, #tpu.memory_space<vmem>>, vector<8x48xf32>
    tpu.vector_store %arg4[%c0_5, %c0_6], %17 {strides = array<i32>} : memref<8x48xf32, #tpu.memory_space<vmem>>, vector<8x48xf32>,
    return
  }
  func.func @transform_0(%arg0: i32) -> (i32, i32) {
    %c0_i32 = arith.constant 0 : i32
    %c0_i32_0 = arith.constant 0 : i32
    return %arg0, %c0_i32 : i32, i32
  }
  func.func @transform_1(%arg0: i32) -> (i32, i32) {
    %c0_i32 = arith.constant 0 : i32
    %c0_i32_0 = arith.constant 0 : i32
    %c0_i32_1 = arith.constant 0 : i32
    return %c0_i32, %c0_i32_0 : i32, i32
  }
  func.func @transform_2(%arg0: i32) -> (i32, i32) {
    %c0_i32 = arith.constant 0 : i32
    %c0_i32_0 = arith.constant 0 : i32
    %c0_i32_1 = arith.constant 0 : i32
    return %c0_i32, %c0_i32_0 : i32, i32
  }
  func.func @transform_3(%arg0: i32) -> (i32, i32) {
    %c0_i32 = arith.constant 0 : i32
    %c0_i32_0 = arith.constant 0 : i32
    return %arg0, %c0_i32 : i32, i32
  }
}

</mosaic_0001>

<bundles_post_ra>
// kernel: tpu_custom_call.1
= control target key start
LH: loop header
LB: loop body
LE: loop exit
PB: predicated region body
PF: predicated region fallthrough
CT: control target
= control target key end

     0   :  { %8 = vsyncpa [#allocation3], 0  ;;  %s828_s0 = inlined_call_operand.hbm [shape: f32[16,32], index: 0, kind: input, shape index: {}]   ;;  %s829_s1 = inlined_call_operand.vmem [shape: f32[1,8], index: 1, kind: input, shape index: {}]   ;;  %s830_s2 = inlined_call_operand.vmem [shape: f32[1,8], index: 2, kind: input, shape index: {}]   ;;  %s831_s3 = inlined_call_operand.hbm [shape: f32[16,48], index: 3, kind: output, shape index: {}]  }
   0x1   :  { %10 = vsyncpa [#allocation3 + $0x1], 0 }
   0x2   :  { %11 = vsyncpa [#allocation4], 0 }
   0x3   :  { %13 = vsyncpa [#allocation4 + $0x1], 0  ;;  %s631_s12 = smov 0   ;;  %s633_s13 = smov 0  }
   0x4   :  { %s635_s14 = smov 0   ;;  %s637_s15 = smov 0  }
   0x5 LB: > { %s652_s16 = sadd.s32 4294967295, %s597_s15   ;;  %s416_s17 = sadd.s32 4294967294, %s597_s15   ;;  %s597_s15 = sphi %s637_s15, %s846_s15   ;;  %s593_s14 = sphi %s635_s14, %s845_s14   ;;  %s589_s13 = sphi %s633_s13, %s844_s13   ;;  %s585_s12 = sphi %s631_s12, %s843_s12  }
   0x6   : > { %s656_s18 = sadd.s32 1, %s597_s15   ;;  %s26_s19 = sadd.s32 1, %s593_s14 }
   0x7   : > { %s23_s20 = ssub.s32 %s597_s15, %s656_s18  ;;  %p33_p0 = scmp.ne.s32.totalorder %s593_s14, %s589_s13 }
   0x8   : > { %p24_p1 = scmp.eq.s32.totalorder %s23_s20, 0  ;;  %p34_p2 = scmp.eq.s32.totalorder %s597_s15, 0 }
   0x9   : > { %p39_p3 = scmp.ne.s32.totalorder %s589_s13, %s585_s12  ;;  %p40_p4 = scmp.eq.s32.totalorder %s652_s16, 0 }
   0xa   : > { %s668_s21 = scalar_select %p24_p1, %s593_s14, %s26_s19  }
   0xb   : > { %p670_p5 = por %p34_p2, %p33_p0  ;;  %p674_p6 = por %p40_p4, %p39_p3 }
   0xc   : > { %p105_p7 = scmp.eq.s32.totalorder %s652_s16, 1  ;;  %p111_p8 = scmp.eq.s32.totalorder %s416_s17, 1 }
   0xd   : > { %p450_p10 = scmp.lt.s32.totalorder %s597_s15, 2  ;;  %s137_s26 = sand.u32 1, %s593_s14  }
   0xe   : > { %p681_p11 = por %p105_p7, %p33_p0  ;;  %p685_p12 = por %p111_p8, %p39_p3 }
   0xf   : > { %s420_s27 = sshll.u32 %s597_s15, 7  ;;  %s419_s28 = sshll.u32 %s137_s26, 3 }
  0x10   : > { %s835_s24 = scalar_select %p681_p11, 1, 0 }
  0x11   : > { %s836_s25 = scalar_select %p685_p12, 1, 0 }
  0x12   : > { %s694_s4 = scalar_lea.hbm %s828_s0, %s420_s27  ;;  %s141_s5 = scalar_lea.vmem [#allocation2], %s419_s28 }
  0x13   : > { %s148_s6 = sshll.u32 %s141_s5, 4  ;;  %p698_p13 = pnand %p450_p10, %p670_p5  ;;  %s702_s6 = int_to_ptr.vmem [resolvable:$true] %s148_s6 }
  0x14   : > { %s138_s8 = scalar_lea.sflag [#allocation3], %s137_s26  ;;  %s501_s9 = scalar_lea.hbm %s694_s4, 128 }
  0x15   : > { %p502_p2 = scmp.ne.s32.totalorder %s694_s4, %s501_s9  ;;  %p503_p3 = pneg %p698_p13 }
  0x16   : > { %s506_s17 = scalar_lea.hbm %s828_s0, 256  ;;  %p507_p5 = scmp.lt.u32.totalorder %s694_s4, %s828_s0 }
  0x17   : > { %p504_p4 = pnand %p503_p3, %p502_p2  ;;  %p508_p8 = scmp.lt.u32.totalorder %s506_s17, %s501_s9 }
  0x18   : > { %p510_p9 = scmp.lt.u32.totalorder %s501_s9, %s694_s4 }
  0x19   : > { %p505_p7 = pneg %p504_p4  ;;  %p509_p10 = por %p508_p8, %p507_p5 }
  0x1b   : > { %p511_p0 = por %p510_p9, %p509_p10 }
  0x1d   : > { %p512_p1 = pnand %p511_p0, %p505_p7 }
  0x1f   : > { %515 = shalt.err (!%p512_p1)
}
  0x20   : > { %s516_s22 = scalar_lea.vmem %s702_s6, 128  ;;  %s599_s26 = smov [#allocation2]  }
  0x21   : > { %p517_p2 = scmp.ne.s32.totalorder %s702_s6, %s516_s22  ;;  %s521_s27 = sshll.u32 %s599_s26, 4  ;;  %s522_s27 = int_to_ptr.vmem [resolvable:$false] %s521_s27 }
  0x22   : > { %s523_s28 = scalar_lea.vmem %s522_s27, 256  ;;  %p524_p11 = scmp.lt.s32.totalorder %s702_s6, %s522_s27 }
  0x23   : > { %p519_p4 = pnand %p517_p2, %p503_p3  ;;  %p525_p5 = scmp.lt.s32.totalorder %s523_s28, %s516_s22 }
  0x25   : > { %p520_p12 = pneg %p519_p4  ;;  %p526_p8 = por %p525_p5, %p524_p11 }
  0x27   : > { %p527_p9 = pnand %p526_p8, %p520_p12 }
  0x29   : > { %530 = shalt.err (!%p527_p9)
}
  0x2a   : > { %445 = dma.hbm_to_vmem [thread:$0]  (!%p698_p13), %s694_s4, 128, %s702_s6, %s138_s8  }
  0x2b   : > { %p838_p0 = scmp.lt.s32.totalorder %s597_s15, 3  ;;  %p839_p1 = scmp.ge.s32.totalorder %s597_s15, 1 }
  0x2d   : > { %p154_p3 = pnand %p839_p1, %p838_p0 }
  0x2e   : > { %s736_s29 = sand.u32 (!%p154_p3), 1, %s589_s13  }
  0x2f   : > { %157 = sbr.rel (%p154_p3) target bundleno = 514 (0x202), region = 32  ;;  %s422_s30 = sshll.u32 (!%p154_p3), %s736_s29, 3 }
  0x30   : > { %s160_s5 = scalar_lea.sflag (!%p154_p3), [#allocation3], %s736_s29  ;;  %s163_s7 = scalar_lea.vmem (!%p154_p3), [#allocation2], %s422_s30 }
  0x36   : > { %576 = dma.done.wait (%p674_p6), %s160_s5, 128  }
  0x37   : > { %578 = vsyncadd (%p674_p6), %s160_s5, 4294967168  ;;  %v600_v0 = vmov 7   ;;  %v746_v1 = vld [vmem:[%s163_s7] sm:$0xff]  ;;  %v601_v2 = vmov 3   ;;  %s602_s23 = smov 8   ;;  %vm218_vm0 = vcmask 64512  }
  0x38   : > { %494 = vset.pattern.permute.xlu0 %v600_v0  ;;  %v424_v3 = vld [vmem:[%s829_s1] ss:$0 sm:$0xff]  ;;  %v603_v23 = vmov 683565275   ;;  %v604_v25 = vmov 2475754826  }
  0x39   : > { %209 = vperm.xlu0 %494, %v746_v1   ;;  %v425_v5 = vld [vmem:[%s830_s2] ss:$0 sm:$0xff]  ;;  %v605_v28 = vmov 2131351028   ;;  %v606_v31 = vmov 2102212464  }
  0x3a   : > { %v607_v34 = vmov 920167782   ;;  %v608_v37 = vmov 1326507024   ;;  %s609_s10 = smov 32   ;;  %s431_s11 = sshll.u32 %s652_s16, 7 }
  0x3b   : > { %s185_s17 = scalar_lea.vmem [#allocation5], %s422_s30  ;;  %vm328_vm14 = vcmask 261120   ;;  %vm330_vm15 = vcmask 392192   ;;  %s783_s26 = scalar_lea.hbm %s831_s3, %s431_s11 }
  0x3c   : > { %s346_s19 = sshll.u32 %s185_s17, 4  ;;  %s333_s16 = scalar_lea.sflag [#allocation4], %s736_s29  ;;  %s785_s19 = int_to_ptr.vmem [resolvable:$true] %s346_s19 }
  0x3d   : > { %495 = vset.pattern.permute.xlu0 %v601_v2  ;;  %s531_s27 = scalar_lea.vmem %s785_s19, 128  ;;  %p840_p11 = scmp.ne.s32.totalorder %s835_s24, 0 }
  0x3e   : > { %191 = vperm.xlu0 %495, %v746_v1   ;;  %p532_p6 = scmp.ne.s32.totalorder %s785_s19, %s531_s27  ;;  %s610_s28 = smov [#allocation5]  }
  0x3f   : > { %s535_s30 = sshll.u32 %s610_s28, 4  ;;  %s536_s30 = int_to_ptr.vmem [resolvable:$false] %s535_s30 }
  0x40   : > { %p533_p12 = pnand %p532_p6, %p840_p11  ;;  %s537_s5 = scalar_lea.vmem %s536_s30, 256 }
  0x41   : > { %p538_p7 = scmp.lt.s32.totalorder %s785_s19, %s536_s30  ;;  %p539_p10 = scmp.lt.s32.totalorder %s537_s5, %s531_s27 }
  0x42   : > { %496 = vset.pattern.permute.xlu0 %v600_v0  ;;  %p534_p13 = pneg %p533_p12 }
  0x43   : > { %p540_p2 = por %p539_p10, %p538_p7 }
  0x45   : > { %p541_p4 = pnand %p540_p2, %p534_p13 }
  0xb8   : > { %v210_v4 = vpop.permute.xlu0 %209 }
  0xb9   : > { %v212_v6 = vmul.f32 %v424_v3, %v210_v4 }
  0xbb   : > { %v213_v7 = vadd.f32 %v425_v5, %v212_v6 }
  0xbd   : > { %215 = vrot.lane.b32.xlu1 %v213_v7, %s602_s23  ;;  %v192_v8 = vpop.permute.xlu0 %191 }
  0xbe   : > { %v200_v9 = vmul.f32 %v424_v3, %v192_v8 }
  0xc0   : > { %v207_v10 = vadd.f32 %v425_v5, %v200_v9 }
 0x12f   : > { %v216_v11 = vpop.permute.xlu1 %215 }
 0x130   : > { %v756_v12 = vsel %vm218_vm0, %v207_v10, %v216_v11 }
 0x131   : > { %v223_v13 = vand.u32 2139095040, %v756_v12  ;;  %v220_v17 = vand.u32 2147483647, %v756_v12  ;;  %vm222_vm8 = vcmp.lt.s32.totalorder %v756_v12, 0  ;;  %vm312_vm13 = vweird.f32 %v756_v12 }
 0x133   : > { %v224_v14 = vshrl.u32 %v223_v13, 23  ;;  %v227_v20 = vand.u32 8388607, %v220_v17  ;;  %vm221_vm9 = vcmp.le.f32.partialorder %v220_v17, 0.7853982 }
 0x135   : > { %v426_v15 = vadd.s32 4294967169, %v224_v14  ;;  %v228_v39 = vor.u32 8388608, %v227_v20 }
 0x137   : > { %v230_v16 = vadd.s32 1, %v426_v15  ;;  %v268_v53 = vshll.u32 %v228_v39, 8 }
 0x139   : > { %vm231_vm1 = vcmp.gt.s32.totalorder %v230_v16, 0 }
 0x13a   : > { %v232_v18 = vsel %vm231_vm1, %v230_v16, 0 }
 0x13b   : > { %v234_v19 = vand.u32 31, %v232_v18  ;;  %v233_v22 = vshrl.u32 %v232_v18, 5 }
 0x13d   : > { %v235_v21 = vsub.s32 32, %v234_v19  ;;  %v237_v24 = vshll.u32 %v603_v23, %v234_v19  ;;  %v240_v26 = vshll.u32 %v604_v25, %v234_v19  ;;  %v243_v30 = vshll.u32 %v605_v28, %v234_v19 }
 0x13e   : > { %v246_v33 = vshll.u32 %v606_v31, %v234_v19  ;;  %v249_v36 = vshll.u32 %v607_v34, %v234_v19  ;;  %vm252_vm2 = vcmp.lt.s32.totalorder %v233_v22, 1  ;;  %vm255_vm3 = vcmp.lt.s32.totalorder %v233_v22, 4 }
 0x13f   : > { %v238_v27 = vshrl.u32 %v604_v25, %v235_v21  ;;  %v241_v29 = vshrl.u32 %v605_v28, %v235_v21  ;;  %v244_v32 = vshrl.u32 %v606_v31, %v235_v21  ;;  %v247_v35 = vshrl.u32 %v607_v34, %v235_v21 }
 0x140   : > { %v250_v38 = vshrl.u32 %v608_v37, %v235_v21  ;;  %v236_v48 = vshrl.u32 %v603_v23, %v235_v21  ;;  %vm254_vm4 = vcmp.lt.s32.totalorder %v233_v22, 3  ;;  %vm253_vm5 = vcmp.lt.s32.totalorder %v233_v22, 2 }
 0x141   : > { %v239_v40 = vor.u32 %v238_v27, %v237_v24  ;;  %v242_v41 = vor.u32 %v241_v29, %v240_v26  ;;  %v245_v42 = vor.u32 %v244_v32, %v243_v30  ;;  %v248_v43 = vor.u32 %v247_v35, %v246_v33 }
 0x142   : > { %v251_v44 = vor.u32 %v250_v38, %v249_v36 }
 0x143   : > { %v257_v45 = vsel %vm255_vm3, %v245_v42, 2102212464  ;;  %v260_v46 = vsel %vm252_vm2, %v239_v40, %v242_v41  ;;  %v264_v47 = vsel %vm252_vm2, %v242_v41, %v245_v42  ;;  %v261_v49 = vsel %vm255_vm3, %v248_v43, 920167782 }
 0x144   : > { %v265_v50 = vsel %vm255_vm3, %v251_v44, 1326507024  ;;  %v262_v51 = vsel %vm254_vm4, %v245_v42, %v261_v49  ;;  %v256_v54 = vsel %vm252_vm2, %v236_v48, %v239_v40  ;;  %v258_v55 = vsel %vm254_vm4, %v242_v41, %v257_v45 }
 0x145   : > { %v266_v52 = vsel %vm254_vm4, %v248_v43, %v265_v50  ;;  %v263_v56 = vsel %vm253_vm5, %v260_v46, %v262_v51  ;;  %v259_v62 = vsel %vm253_vm5, %v256_v54, %v258_v55 }
 0x146   : > { %v267_v57 = vsel %vm253_vm5, %v264_v47, %v266_v52  ;;  %v765_v60 = vmul.u32.u64.low %v268_v53, %v263_v56  ;;  %v766_v61 = vmul.u32.u64.high %v268_v53, %v263_v56, %v765_v60  ;;  %v275_v0 = vmul.u32 %v268_v53, %v259_v62 }
 0x147   : > { %v762_v58 = vmul.u32.u64.low %v268_v53, %v267_v57  ;;  %v763_v59 = vmul.u32.u64.high %v268_v53, %v267_v57, %v762_v58 }
 0x148   : > { %v278_v63 = vadd.s32 1, %v766_v61 }
 0x149   : > { %vm277_vm6 = vc.u32 %v763_v59, %v765_v60  ;;  %v276_v14 = vadd.s32 %v765_v60, %v763_v59 }
 0x14a   : > { %v279_v2 = vsel %vm277_vm6, %v278_v63, %v766_v61 }
 0x14b   : > { %v280_v3 = vadd.s32 %v279_v2, %v275_v0 }
 0x14d   : > { %v281_v4 = vadd.s32 536870912, %v280_v3 }
 0x14f   : > { %v282_v5 = vshrl.u32 %v281_v4, 30 }
 0x151   : > { %v283_v6 = vshll.u32 %v282_v5, 30  ;;  %v306_v27 = vsub.s32 4, %v282_v5 }
 0x153   : > { %v284_v7 = vsub.s32 %v280_v3, %v283_v6  ;;  %v307_v30 = vsel %vm222_vm8, %v306_v27, %v282_v5 }
 0x154   : > { %v309_v32 = vsel %vm221_vm9, 0, %v307_v30 }
 0x155   : > { %v286_v8 = vsub.s32 0, %v284_v7  ;;  %v313_v33 = vadd.s32 3, %v309_v32 }
 0x157   : > { %v427_v9 = vmin.u32 %v286_v8, %v284_v7  ;;  %v314_v34 = vand.u32 3, %v313_v33 }
 0x159   : > { %v288_v10 = vclz %v427_v9  ;;  %vm319_vm10 = vcmp.eq.s32.totalorder %v314_v34, 2  ;;  %vm316_vm11 = vcmp.eq.s32.totalorder %v314_v34, 0  ;;  %vm315_vm12 = vcmp.lt.s32.totalorder %v314_v34, 2 }
 0x15b   : > { %v428_v11 = vadd.s32 4294967294, %v288_v10 }
 0x15d   : > { %vm429_vm7 = vcmp.lt.s32.totalorder %v428_v11, 0 }
 0x15e   : > { %v291_v13 = vsel %vm429_vm7, 0, %v428_v11 }
 0x15f   : > { %v292_v15 = vsub.s32 32, %v291_v13  ;;  %v296_v16 = vsub.s32 4294967266, %v291_v13  ;;  %v293_v18 = vshll.u32 %v284_v7, %v291_v13 }
 0x161   : > { %v294_v19 = vshrl.u32 %v276_v14, %v292_v15  ;;  %v297_v20 = vadd.s32 127, %v296_v16 }
 0x163   : > { %v295_v21 = vor.u32 %v294_v19, %v293_v18  ;;  %v298_v22 = vshll.u32 %v297_v20, 23 }
 0x165   : > { %v299_v23 = vor.u32 4788187, %v298_v22  ;;  %v302_v25 = vcvt.s32.f32 %v295_v21 }
 0x167   : > { %v300_v24 = vand.u32 2147483647, %v299_v23 }
 0x169   : > { %v303_v26 = vmul.f32 %v302_v25, %v300_v24 }
 0x16b   : > { %v304_v28 = vxor.u32 2147483648, %v303_v26 }
 0x16d   : > { %v305_v29 = vsel %vm222_vm8, %v304_v28, %v303_v26 }
 0x16e   : > { %v308_v31 = vsel %vm221_vm9, %v756_v12, %v305_v29 }
 0x16f   : > { %497 = vcosq.f32 %v308_v31 }
 0x170   : > { %499 = vsinq.f32 %v308_v31 }
 0x179   : > { %v498_v35 = vpop.eup %497 }
 0x17a   : > { %v500_v36 = vpop.eup %499  ;;  %v320_v37 = vxor.u32 2147483648, %v498_v35 }
 0x17b   : > { %v317_v38 = vxor.u32 2147483648, %v500_v36 }
 0x17c   : > { %v321_v39 = vsel %vm319_vm10, %v320_v37, %v500_v36 }
 0x17d   : > { %v318_v17 = vsel %vm316_vm11, %v498_v35, %v317_v38 }
 0x17e   : > { %v322_v40 = vsel %vm315_vm12, %v318_v17, %v321_v39 }
 0x17f   : > { %v323_v41 = vsel %vm312_vm13, nan, %v322_v40 }
 0x180   : > { %325 = vrot.lane.b32.xlu1 %v323_v41, %s609_s10 }
 0x1f2   : > { %v326_v42 = vpop.permute.xlu1 %325 }
 0x1f3   : > { %v329_v12 = vsel %vm328_vm14, %v746_v1, %v326_v42 }
 0x1f4   : > { %331 = vst.msk [vmem:[%s185_s17] sm:$0xff] %vm330_vm15, %v329_v12 }
 0x1f5   : > { %544 = shalt.err (!%p541_p4)
}
 0x1f6   : > { %s545_s29 = scalar_lea.hbm %s783_s26, 128  ;;  %s549_s6 = scalar_lea.hbm %s831_s3, 256 }
 0x1f7   : > { %p546_p5 = scmp.ne.s32.totalorder %s783_s26, %s545_s29  ;;  %p550_p0 = scmp.lt.u32.totalorder %s783_s26, %s831_s3 }
 0x1f8   : > { %p551_p1 = scmp.lt.u32.totalorder %s549_s6, %s545_s29  ;;  %p553_p6 = scmp.lt.u32.totalorder %s545_s29, %s783_s26 }
 0x1f9   : > { %p547_p8 = pnand %p546_p5, %p840_p11 }
 0x1fa   : > { %p552_p3 = por %p551_p1, %p550_p0 }
 0x1fb   : > { %p548_p9 = pneg %p547_p8 }
 0x1fc   : > { %p554_p12 = por %p553_p6, %p552_p3 }
 0x1fe   : > { %p555_p13 = pnand %p554_p12, %p548_p9 }
 0x200   : > { %558 = shalt.err (!%p555_p13)
}
 0x201   : > { %440 = dma.vmem_to_hbm [thread:$0]  (%p840_p11), %s785_s19, 128, %s783_s26, %s333_s16  }
 0x202 PF: > { %s358_s23 = sand.u32 1, %s585_s12   ;;  %p841_p7 = scmp.ne.s32.totalorder %s836_s25, 0 }
 0x203   : > { %p842_p10 = scmp.ge.s32.totalorder %s597_s15, 2  ;;  %s359_s10 = scalar_lea.sflag [#allocation4], %s358_s23 }
 0x205   : > { %p447_p2 = pnand %p842_p10, %p841_p7 }
 0x207   : > { %580 = dma.done.wait (!%p447_p2), %s359_s10, 128  }
 0x208   : > { %582 = vsyncadd (!%p447_p2), %s359_s10, 4294967168  ;;  %p16_p4 = scmp.ge.s32.totalorder %s656_s18, 4   ;;  %s843_s12 = smov %s589_s13 }
 0x209   : > { %s844_s13 = smov %s593_s14  ;;  %s845_s14 = smov %s668_s21 }
 0x20a   : > { %s846_s15 = smov %s656_s18  ;;  %18 = sbr.rel (!%p16_p4) target bundleno = 5 (0x5), region = 77 }
 0x211   :  { %364 = vsyncpa [#allocation3], 1 }
 0x212   :  { %366 = vsyncpa [#allocation3 + $0x1], 1 }
 0x213   :  { %367 = vsyncpa [#allocation4], 1 }
 0x214   :  { %369 = vsyncpa [#allocation4 + $0x1], 1 }

</bundles_post_ra>
